<compile_context>
chip_gen: v7x
topology: tpu7x:2x2x1
jax: 0.10.0
libtpu: 0.0.40
codegen_flags: <defaults>
</compile_context>

<pallas_src>
import functools

import jax
import jax.numpy as jnp
import numpy as np
from jax.experimental import pallas as pl
from jax.experimental.pallas import tpu as pltpu


# ----------------------------------------------------------------------------
# Tiled projection matmul (qkv_proj / out_proj)
# ----------------------------------------------------------------------------
def _matmul_kernel(x_ref, w_ref, o_ref, acc_ref):
    @pl.when(pl.program_id(2) == 0)
    def _():
        acc_ref[...] = jnp.zeros_like(acc_ref)

    acc_ref[...] += jnp.dot(x_ref[...], w_ref[...],
                            preferred_element_type=jnp.float32)

    @pl.when(pl.program_id(2) == pl.num_programs(2) - 1)
    def _():
        o_ref[...] = acc_ref[...].astype(o_ref.dtype)


def linear_pallas(x, w, *, bm=128, bn=256, bk=512):
    """x: [T, K], w: [K, N] -> [T, N]; bias-free projection, f32 accumulate."""
    T, K = x.shape
    K2, N = w.shape
    assert K == K2
    bm = min(bm, T)
    bn = min(bn, N)
    bk = min(bk, K)
    assert T % bm == 0 and N % bn == 0 and K % bk == 0, "demo shapes must tile evenly"
    grid = (T // bm, N // bn, K // bk)
    itemsize = int(jnp.dtype(x.dtype).itemsize)
    return pl.pallas_call(
        _matmul_kernel,
        out_shape=jax.ShapeDtypeStruct((T, N), x.dtype),
        grid=grid,
        in_specs=[
            pl.BlockSpec((bm, bk), lambda i, j, k: (i, k)),
            pl.BlockSpec((bk, bn), lambda i, j, k: (k, j)),
        ],
        out_specs=pl.BlockSpec((bm, bn), lambda i, j, k: (i, j)),
        scratch_shapes=[pltpu.VMEM((bm, bn), jnp.float32)],
        compiler_params=pltpu.CompilerParams(
            dimension_semantics=("parallel", "parallel", "arbitrary"),
            vmem_limit_bytes=32 * 1024 * 1024),
        cost_estimate=pl.CostEstimate(
            flops=int(2 * T * N * K),
            transcendentals=0,
            bytes_accessed=int((T * K + K * N + T * N) * itemsize)),
    )(x, w)


# ----------------------------------------------------------------------------
# Flash attention with in-kernel GPT-J (interleaved) RoPE
# ----------------------------------------------------------------------------
def _rope(x_ref, cos_ref, sin_a_ref, sin_b_ref):
    """GPT-J interleaved RoPE via XLU lane rotations (no MXU, no perm matmul).

    rope(x)[2i]   = x[2i]*cos_i - x[2i+1]*sin_i
    rope(x)[2i+1] = x[2i+1]*cos_i + x[2i]*sin_i
    implemented as  x*cos + roll(x,+1 lane left)*sin_a + roll(x,+1 lane right)*sin_b
    with sin_a = [-s0, 0, -s1, 0, ...], sin_b = [0, +s0, 0, +s1, ...] (0 past rotary_dim).
    """
    x = x_ref[...].astype(jnp.float32)
    d = x.shape[-1]
    x_left = pltpu.roll(x, d - 1, 1)   # x_left[d]  = x[d+1]
    x_right = pltpu.roll(x, 1, 1)      # x_right[d] = x[d-1]
    return x * cos_ref[...] + x_left * sin_a_ref[...] + x_right * sin_b_ref[...]


def _flash_attn_kernel(q_ref, k_ref, v_ref,
                       cq_ref, saq_ref, sbq_ref,
                       ck_ref, sak_ref, sbk_ref,
                       o_ref, m_ref, l_ref, acc_ref, *, scale):
    qi = pl.program_id(1)
    ki = pl.program_id(2)
    blk = q_ref.shape[0]

    @pl.when(ki <= qi)  # causal: kv tiles past the diagonal contribute nothing
    def _():
        @pl.when(ki == 0)
        def _():
            m_ref[...] = jnp.full_like(m_ref, -1e30)
            l_ref[...] = jnp.zeros_like(l_ref)
            acc_ref[...] = jnp.zeros_like(acc_ref)

        in_dtype = q_ref.dtype
        # RoPE in f32 (VPU/XLU), feed the MXU bf16/f32 inputs with f32 accumulation.
        qr = (_rope(q_ref, cq_ref, saq_ref, sbq_ref) * scale).astype(in_dtype)
        kr = _rope(k_ref, ck_ref, sak_ref, sbk_ref).astype(in_dtype)

        s = jax.lax.dot_general(qr, kr, (((1,), (1,)), ((), ())),
                                preferred_element_type=jnp.float32)  # [blk, blk] f32

        row = qi * blk + jax.lax.broadcasted_iota(jnp.int32, s.shape, 0)
        col = ki * blk + jax.lax.broadcasted_iota(jnp.int32, s.shape, 1)
        s = jnp.where(row >= col, s, -1e30)  # scores stay f32, so -1e30 is safe

        m_prev = m_ref[...]
        m_new = jnp.maximum(m_prev, jnp.max(s, axis=-1, keepdims=True))
        alpha = jnp.exp(m_prev - m_new)
        p = jnp.exp(s - m_new)
        l_ref[...] = alpha * l_ref[...] + jnp.sum(p, axis=-1, keepdims=True)
        acc_ref[...] = alpha * acc_ref[...] + jnp.dot(
            p.astype(v_ref.dtype), v_ref[...], preferred_element_type=jnp.float32)
        m_ref[...] = m_new

        @pl.when(ki == qi)  # last kv tile with unmasked work for this q tile
        def _():
            inv_l = pl.reciprocal(l_ref[...], approx=True)
            o_ref[...] = (acc_ref[...] * inv_l).astype(o_ref.dtype)


def gptj_flash_attention(qkv, cos, sin_a, sin_b, *, num_heads, head_size, scale,
                         block_q=128):
    """qkv: [T, 3*H*D] fused projection output; cos/sin_a/sin_b: [T, D] f32 -> [T, H*D]."""
    T = qkv.shape[0]
    E = num_heads * head_size
    assert qkv.shape[1] == 3 * E
    # Head column slices of [T, 3E] must be lane-aligned.
    # TODO(synk): pad/pack heads into the lane dim for head_size < 128.
    assert head_size % 128 == 0
    blk = min(block_q, T)
    assert T % blk == 0 and blk % 8 == 0
    nq = T // blk
    grid = (num_heads, nq, nq)

    # Causal clamp: for ki > qi the block index does not change -> no new DMA, and the
    # compute for those steps is skipped inside the kernel with pl.when.
    q_spec = pl.BlockSpec((blk, head_size), lambda h, qi, ki: (qi, h))
    k_spec = pl.BlockSpec((blk, head_size),
                          lambda h, qi, ki: (jnp.minimum(ki, qi), num_heads + h))
    v_spec = pl.BlockSpec((blk, head_size),
                          lambda h, qi, ki: (jnp.minimum(ki, qi), 2 * num_heads + h))
    tq_spec = pl.BlockSpec((blk, head_size), lambda h, qi, ki: (qi, 0))
    tk_spec = pl.BlockSpec((blk, head_size),
                           lambda h, qi, ki: (jnp.minimum(ki, qi), 0))

    itemsize = int(jnp.dtype(qkv.dtype).itemsize)
    kernel = functools.partial(_flash_attn_kernel, scale=scale)
    return pl.pallas_call(
        kernel,
        out_shape=jax.ShapeDtypeStruct((T, E), qkv.dtype),
        grid=grid,
        in_specs=[q_spec, k_spec, v_spec,
                  tq_spec, tq_spec, tq_spec,
                  tk_spec, tk_spec, tk_spec],
        out_specs=pl.BlockSpec((blk, head_size), lambda h, qi, ki: (qi, h)),
        scratch_shapes=[pltpu.VMEM((blk, 1), jnp.float32),
                        pltpu.VMEM((blk, 1), jnp.float32),
                        pltpu.VMEM((blk, head_size), jnp.float32)],
        compiler_params=pltpu.CompilerParams(
            dimension_semantics=("parallel", "parallel", "arbitrary"),
            vmem_limit_bytes=32 * 1024 * 1024),
        cost_estimate=pl.CostEstimate(
            flops=int(2 * num_heads * T * T * head_size),      # 2 matmuls, ~causal half
            transcendentals=int(num_heads * T * T // 2),
            bytes_accessed=int((qkv.size + T * E) * itemsize)),
    )(qkv, qkv, qkv, cos, sin_a, sin_b, cos, sin_a, sin_b)


# ----------------------------------------------------------------------------
# Module wrapper
# ----------------------------------------------------------------------------
class GPTJAttentionPallas:
    def __init__(self, hidden_size, num_heads, rotary_dim, rope_theta=10000.0,
                 dtype=jnp.bfloat16, key=None):
        assert hidden_size % num_heads == 0
        assert rotary_dim % 2 == 0
        self.hidden_size = hidden_size
        self.num_heads = num_heads
        self.head_size = hidden_size // num_heads
        assert rotary_dim <= self.head_size
        self.rotary_dim = rotary_dim
        self.rope_theta = rope_theta
        self.scaling = self.head_size ** (-0.5)
        self.dtype = dtype

        key = jax.random.PRNGKey(0) if key is None else key
        k1, k2 = jax.random.split(key)
        # qkv_proj: hidden -> 3*hidden (no bias); out_proj: hidden -> hidden (no bias)
        # stored as [in, out] so kernels compute x @ W (== PyTorch x @ weight.T).
        self.w_qkv = (jax.random.normal(k1, (hidden_size, 3 * hidden_size), jnp.float32)
                      * (hidden_size ** -0.5)).astype(dtype)
        self.w_out = (jax.random.normal(k2, (hidden_size, hidden_size), jnp.float32)
                      * (hidden_size ** -0.5)).astype(dtype)

    def _rope_tables(self, position_ids):
        """cos / signed-sin tables (f32, [T, head_size]) for the in-kernel interleaved RoPE."""
        T = position_ids.shape[0]
        D, rd = self.head_size, self.rotary_dim
        inv_freq = 1.0 / (self.rope_theta ** (
            jnp.arange(0, rd, 2, dtype=jnp.float32) / rd))
        sinusoid = position_ids.astype(jnp.float32)[:, None] * inv_freq[None, :]  # [T, rd/2]
        sin = jnp.sin(sinusoid)
        cos = jnp.cos(sinusoid)
        zeros = jnp.zeros_like(sin)
        cos_i = jnp.repeat(cos, 2, axis=-1)                              # [c0,c0,c1,c1,...]
        sin_a = jnp.stack([-sin, zeros], axis=-1).reshape(T, rd)         # [-s0,0,-s1,0,...]
        sin_b = jnp.stack([zeros, sin], axis=-1).reshape(T, rd)          # [0,+s0,0,+s1,...]
        cos_full = jnp.concatenate([cos_i, jnp.ones((T, D - rd), jnp.float32)], -1)
        sin_a_full = jnp.concatenate([sin_a, jnp.zeros((T, D - rd), jnp.float32)], -1)
        sin_b_full = jnp.concatenate([sin_b, jnp.zeros((T, D - rd), jnp.float32)], -1)
        return cos_full, sin_a_full, sin_b_full

    def __call__(self, position_ids, hidden_states):
        qkv = linear_pallas(hidden_states, self.w_qkv)            # [T, 3E], no split needed
        cos, sin_a, sin_b = self._rope_tables(position_ids)       # f32 [T, D]
        attn = gptj_flash_attention(qkv, cos, sin_a, sin_b,
                                    num_heads=self.num_heads,
                                    head_size=self.head_size,
                                    scale=self.scaling)           # [T, E]
        return linear_pallas(attn, self.w_out)


# ----------------------------------------------------------------------------
# Pure-JAX reference (correctness sanity check)
# ----------------------------------------------------------------------------
def ref_forward(mod: GPTJAttentionPallas, position_ids, hidden_states):
    T, E = hidden_states.shape
    H, D, rd = mod.num_heads, mod.head_size, mod.rotary_dim
    qkv = jnp.dot(hidden_states.astype(jnp.float32),
                  mod.w_qkv.astype(jnp.float32)).astype(mod.dtype)
    q, k, v = jnp.split(qkv, 3, axis=-1)
    q = q.reshape(T, H, D).astype(jnp.float32)
    k = k.reshape(T, H, D).astype(jnp.float32)
    v = v.reshape(T, H, D).astype(jnp.float32)

    inv_freq = 1.0 / (mod.rope_theta ** (jnp.arange(0, rd, 2, dtype=jnp.float32) / rd))
    sinusoid = position_ids.astype(jnp.float32)[:, None] * inv_freq[None, :]
    sin = jnp.concatenate([jnp.repeat(jnp.sin(sinusoid), 2, axis=-1),
                           jnp.zeros((T, D - rd), jnp.float32)], -1)
    cos = jnp.concatenate([jnp.repeat(jnp.cos(sinusoid), 2, axis=-1),
                           jnp.ones((T, D - rd), jnp.float32)], -1)

    def rotate_every_two(x):
        x0 = x[..., ::2]
        x1 = x[..., 1::2]
        return jnp.stack((-x1, x0), axis=-1).reshape(x.shape)

    def rope(x):
        return x * cos[:, None, :] + rotate_every_two(x) * sin[:, None, :]

    qr = (rope(q) * mod.scaling).astype(mod.dtype).astype(jnp.float32)
    kr = rope(k).astype(mod.dtype).astype(jnp.float32)
    s = jnp.einsum("thd,shd->hts", qr, kr)
    row = jnp.arange(T)[:, None]
    col = jnp.arange(T)[None, :]
    s = jnp.where(row >= col, s, -1e30)
    p = jax.nn.softmax(s, axis=-1).astype(mod.dtype).astype(jnp.float32)
    o = jnp.einsum("hts,shd->thd", p, v).astype(mod.dtype).reshape(T, E)
    return jnp.dot(o.astype(jnp.float32), mod.w_out.astype(jnp.float32)).astype(mod.dtype)


# ----------------------------------------------------------------------------
if __name__ == "__main__":
    # Small GPT-J-like config: hidden=512, 4 heads (head_size=128), rotary_dim=64,
    # T=256 tokens so the flash kernel exercises multiple q/kv tiles + causal skipping.
    T = 256
    HIDDEN = 512
    HEADS = 4
    ROTARY_DIM = 64

    key = jax.random.PRNGKey(0)
    k_mod, k_x = jax.random.split(key)
    mod = GPTJAttentionPallas(HIDDEN, HEADS, ROTARY_DIM, dtype=jnp.bfloat16, key=k_mod)

    hidden_states = jax.random.normal(k_x, (T, HIDDEN), jnp.float32).astype(jnp.bfloat16)
    position_ids = jnp.arange(T, dtype=jnp.int32)

    out = jax.block_until_ready(mod(position_ids, hidden_states))
    ref = jax.block_until_ready(ref_forward(mod, position_ids, hidden_states))

    np.testing.assert_allclose(
        np.asarray(jnp.asarray(out, jnp.float32)),
        np.asarray(jnp.asarray(ref, jnp.float32)),
        rtol=5e-2, atol=5e-2)

    print("KERNEL_OK")
</pallas_src>

<mosaic_0001>
module attributes {stable_mosaic.version = 11 : i64} {
  func.func @_matmul_kernel(%arg0: i32, %arg1: i32, %arg2: i32, %arg3: memref<128x512xbf16, #tpu.memory_space<vmem>>, %arg4: memref<512x256xbf16, #tpu.memory_space<vmem>>, %arg5: memref<128x256xbf16, #tpu.memory_space<vmem>>, %arg6: memref<128x256xf32, #tpu.memory_space<vmem>>) attributes {dimension_semantics = [#tpu.dimension_semantics<parallel>, #tpu.dimension_semantics<parallel>, #tpu.dimension_semantics<arbitrary>], iteration_bounds = array<i64: 2, 6, 1>, scalar_prefetch = 0 : i64, scratch_operands = 1 : i64, tpu.core_type = #tpu.core_type<tc>, window_params = [{transform_indices = @transform_0, window_bounds = array<i64: 128, 512>}, {transform_indices = @transform_1, window_bounds = array<i64: 512, 256>}, {transform_indices = @transform_2, window_bounds = array<i64: 128, 256>}]} {
    %c0_i32 = arith.constant 0 : i32
    %0 = arith.cmpi eq, %arg2, %c0_i32 : i32
    %1 = arith.extui %0 : i1 to i32
    %c0_i32_0 = arith.constant 0 : i32
    %2 = arith.cmpi ne, %1, %c0_i32_0 : i32
    scf.if %2 {
      %cst_10 = arith.constant 0.000000e+00 : f32
      %12 = vector.broadcast %cst_10 : f32 to vector<128x256xf32>
      %c0_11 = arith.constant 0 : index
      %c0_12 = arith.constant 0 : index
      %13 = vector.load %arg6[%c0_11, %c0_12] : memref<128x256xf32, #tpu.memory_space<vmem>>, vector<128x256xf32>
      tpu.vector_store %arg6[%c0_11, %c0_12], %12 {strides = array<i32>} : memref<128x256xf32, #tpu.memory_space<vmem>>, vector<128x256xf32>,
    } else {
    }
    %c0 = arith.constant 0 : index
    %c0_1 = arith.constant 0 : index
    %3 = vector.load %arg6[%c0, %c0_1] : memref<128x256xf32, #tpu.memory_space<vmem>>, vector<128x256xf32>
    %c0_2 = arith.constant 0 : index
    %c0_3 = arith.constant 0 : index
    %4 = vector.load %arg3[%c0_2, %c0_3] : memref<128x512xbf16, #tpu.memory_space<vmem>>, vector<128x512xbf16>
    %c0_4 = arith.constant 0 : index
    %c0_5 = arith.constant 0 : index
    %5 = vector.load %arg4[%c0_4, %c0_5] : memref<512x256xbf16, #tpu.memory_space<vmem>>, vector<512x256xbf16>
    %cst = arith.constant dense<0.000000e+00> : vector<128x256xf32>
    %6 = tpu.matmul %4, %5, %cst {dimension_numbers = #tpu.dot_dimension_numbers<[1], [0], [0], [1], [0, 0, 1, 1], [], []>} : vector<128x512xbf16>, vector<512x256xbf16>, vector<128x256xf32> -> vector<128x256xf32>
    %7 = arith.addf %3, %6 : vector<128x256xf32>
    %c0_6 = arith.constant 0 : index
    %c0_7 = arith.constant 0 : index
    %8 = vector.load %arg6[%c0_6, %c0_7] : memref<128x256xf32, #tpu.memory_space<vmem>>, vector<128x256xf32>
    tpu.vector_store %arg6[%c0_6, %c0_7], %7 {strides = array<i32>} : memref<128x256xf32, #tpu.memory_space<vmem>>, vector<128x256xf32>,
    %c0_i32_8 = arith.constant 0 : i32
    %9 = arith.cmpi eq, %arg2, %c0_i32_8 : i32
    %10 = arith.extui %9 : i1 to i32
    %c0_i32_9 = arith.constant 0 : i32
    %11 = arith.cmpi ne, %10, %c0_i32_9 : i32
    scf.if %11 {
      %c0_10 = arith.constant 0 : index
      %c0_11 = arith.constant 0 : index
      %12 = vector.load %arg6[%c0_10, %c0_11] : memref<128x256xf32, #tpu.memory_space<vmem>>, vector<128x256xf32>
      %13 = arith.truncf %12 : vector<128x256xf32> to vector<128x256xbf16>
      %c0_12 = arith.constant 0 : index
      %c0_13 = arith.constant 0 : index
      %14 = vector.load %arg5[%c0_12, %c0_13] : memref<128x256xbf16, #tpu.memory_space<vmem>>, vector<128x256xbf16>
      tpu.vector_store %arg5[%c0_12, %c0_13], %13 {strides = array<i32>} : memref<128x256xbf16, #tpu.memory_space<vmem>>, vector<128x256xbf16>,
    } else {
    }
    return
  }
  func.func @transform_0(%arg0: i32, %arg1: i32, %arg2: i32) -> (i32, i32) {
    %c0_i32 = arith.constant 0 : i32
    return %arg0, %arg2 : i32, i32
  }
  func.func @transform_1(%arg0: i32, %arg1: i32, %arg2: i32) -> (i32, i32) {
    %c0_i32 = arith.constant 0 : i32
    return %arg2, %arg1 : i32, i32
  }
  func.func @transform_2(%arg0: i32, %arg1: i32, %arg2: i32) -> (i32, i32) {
    %c0_i32 = arith.constant 0 : i32
    return %arg0, %arg1 : i32, i32
  }
}

</mosaic_0001>

<bundles_post_ra>
// kernel: tpu_custom_call.1
= control target key start
LH: loop header
LB: loop body
LE: loop exit
PB: predicated region body
PF: predicated region fallthrough
CT: control target
= control target key end

     0   :  { %s2626_s0 = inlined_call_operand.hbm [shape: bf16[256,512], index: 0, kind: input, shape index: {}]   ;;  %s2627_s1 = inlined_call_operand.hbm [shape: bf16[512,1536], index: 1, kind: input, shape index: {}]   ;;  %s2628_s2 = inlined_call_operand.hbm [shape: bf16[256,1536], index: 2, kind: output, shape index: {}]  }
   0x1   :  { %2640 = sst [smem:[#allocation18_spill]] %s2626_s0 }
   0x2   :  { %2641 = sst [smem:[#allocation19_spill]] %s2628_s2 }
   0x3   :  { %7 = vsyncpa [#allocation4], 0 }
   0x4   :  { %9 = vsyncpa [#allocation4 + $0x1], 0 }
   0x5   :  { %10 = vsyncpa [#allocation7], 0 }
   0x6   :  { %12 = vsyncpa [#allocation7 + $0x1], 0 }
   0x7   :  { %13 = vsyncpa [#allocation5], 0 }
   0x8   :  { %15 = vsyncpa [#allocation5 + $0x1], 0  ;;  %s2163_s9 = smov 0   ;;  %s2165_s10 = smov 0  }
   0x9   :  { %s2167_s11 = smov 0   ;;  %s2169_s12 = smov 0  }
   0xa   :  { %s2171_s13 = smov 0   ;;  %s2173_s14 = smov 0  }
   0xb   :  { %s2175_s15 = smov 0   ;;  %s2177_s16 = smov 0  }
   0xc   :  { %s2179_s17 = smov 0   ;;  %s2181_s18 = smov 0  }
   0xd   :  { %s2183_s19 = smov 0   ;;  %s2185_s20 = smov 0  }
   0xe   :  { %s2187_s21 = smov 0   ;;  %s2189_s22 = smov 0  }
   0xf LB: > { %2642 = sst [smem:[#allocation12_spill]] %s2119_s18  ;;  %s1456_s23 = sadd.s32 4294967295, %s2135_s22   ;;  %s2135_s22 = sphi %s2189_s22, %s21_s22   ;;  %s2131_s21 = sphi %s2187_s21, %s2674_s21   ;;  %s2127_s20 = sphi %s2185_s20, %s2685_s20   ;;  %s2123_s19 = sphi %s2183_s19, %s2672_s19   ;;  %s2119_s18 = sphi %s2181_s18, %s2684_s18   ;;  %s2115_s17 = sphi %s2179_s17, %s2683_s17   ;;  %s2111_s16 = sphi %s2177_s16, %s2682_s16   ;;  %s2107_s15 = sphi %s2175_s15, %s2681_s15   ;;  %s2103_s14 = sphi %s2173_s14, %s2680_s14   ;;  %s2099_s13 = sphi %s2171_s13, %s2679_s13   ;;  %s2095_s12 = sphi %s2169_s12, %s2678_s12   ;;  %s2091_s11 = sphi %s2167_s11, %s2677_s11   ;;  %s2087_s10 = sphi %s2165_s10, %s2676_s10   ;;  %s2083_s9 = sphi %s2163_s9, %s2675_s9  }
  0x10   : > { %2643 = sst [smem:[#allocation13_spill]] %s2131_s21  ;;  %s40_s24 = sadd.s32 1, %s2131_s21 }
  0x11   : > { %p56_p0 = scmp.ne.s32.totalorder %s2115_s17, %s2111_s16  ;;  %p2630_p1 = scmp.eq.s32.totalorder %s2135_s22, 0 }
  0x12   : > { %p62_p2 = scmp.ne.s32.totalorder %s2111_s16, %s2107_s15  ;;  %p2238_p3 = scmp.eq.s32.totalorder %s1456_s23, 0 }
  0x13   : > { %p2242_p4 = scmp.eq.s32.totalorder %s1456_s23, 11  ;;  %p58_p5 = por %p2630_p1, %p56_p0 }
  0x14   : > { %p2250_p6 = por %p2238_p3, %p62_p2  ;;  %p2629_p7 = scmp.lt.s32.totalorder %s2135_s22, 12 }
  0x15   : > { %s2645_s27 = scalar_select %p2242_p4, 1, 0 }
  0x16   : > { %s2646_s28 = scalar_select %p2250_p6, 1, 0 }
  0x17   : > { %s142_s29 = sand.u32 1, %s2115_s17   ;;  %s1591_s30 = sshll.u32 %s2131_s21, 12 }
  0x18   : > { %s1460_s3 = sshll.u32 %s142_s29, 8  ;;  %s2647_s0 = sld [smem:[#allocation18_spill]] }
  0x19   : > { %s146_s7 = scalar_lea.vmem [#allocation3], %s1460_s3  ;;  %p2264_p8 = pnand %p2629_p7, %p58_p5 }
  0x1a   : > { %s156_s8 = sshll.u32 %s146_s7, 4  ;;  %s2270_s23 = scalar_lea.sflag [#allocation4], %s142_s29  ;;  %s2268_s8 = int_to_ptr.vmem [resolvable:$true] %s156_s8 }
  0x1b   : > { %p1927_p10 = pneg %p2264_p8 }
  0x1e   : > { %s2260_s6 = scalar_lea.hbm %s2647_s0, %s1591_s30  ;;  %s1930_s5 = scalar_lea.hbm %s2647_s0, 8192 }
  0x1f   : > { %s1925_s4 = scalar_lea.hbm %s2260_s6, 4096  ;;  %p1931_p13 = scmp.lt.u32.totalorder %s2260_s6, %s2647_s0 }
  0x20   : > { %p1926_p9 = scmp.ne.s32.totalorder %s2260_s6, %s1925_s4  ;;  %p1932_p0 = scmp.lt.u32.totalorder %s1930_s5, %s1925_s4 }
  0x21   : > { %p1934_p5 = scmp.lt.u32.totalorder %s1925_s4, %s2260_s6 }
  0x22   : > { %p1928_p11 = pnand %p1927_p10, %p1926_p9  ;;  %p1933_p2 = por %p1932_p0, %p1931_p13 }
  0x24   : > { %p1929_p12 = pneg %p1928_p11  ;;  %p1935_p7 = por %p1934_p5, %p1933_p2 }
  0x26   : > { %p1936_p1 = pnand %p1935_p7, %p1929_p12 }
  0x28   : > { %1939 = shalt.err (!%p1936_p1)
}
  0x29   : > { %s1940_s29 = scalar_lea.vmem %s2268_s8, 4096  ;;  %s2137_s30 = smov [#allocation3]  }
  0x2a   : > { %p1941_p9 = scmp.ne.s32.totalorder %s2268_s8, %s1940_s29  ;;  %s1945_s3 = sshll.u32 %s2137_s30, 4  ;;  %s1946_s3 = int_to_ptr.vmem [resolvable:$false] %s1945_s3 }
  0x2b   : > { %s1947_s25 = scalar_lea.vmem %s1946_s3, 8192  ;;  %p1948_p4 = scmp.lt.s32.totalorder %s2268_s8, %s1946_s3 }
  0x2c   : > { %p1943_p11 = pnand %p1941_p9, %p1927_p10  ;;  %p1949_p13 = scmp.lt.s32.totalorder %s1947_s25, %s1940_s29 }
  0x2e   : > { %p1944_p6 = pneg %p1943_p11  ;;  %p1950_p0 = por %p1949_p13, %p1948_p4 }
  0x30   : > { %p1951_p2 = pnand %p1950_p0, %p1944_p6 }
  0x32   : > { %1954 = shalt.err (!%p1951_p2)
}
  0x33   : > { %s2138_s4 = smov 256   ;;  %s2139_s5 = smov 16  }
  0x34   : > { %1651 = dma.hbm_to_vmem [thread:$0]  (!%p2264_p8), %s2260_s6, 4096, %s2268_s8, %s2270_s23, %s2138_s4, %s2138_s4, %s2139_s5  }
  0x35   : > { %p1467_p1 = scmp.ge.s32.totalorder %s2135_s22, 1  ;;  %p188_p4 = scmp.lt.s32.totalorder %s2135_s22, 13 }
  0x36   : > { %s1457_s29 = sadd.s32 4294967294, %s2135_s22   ;;  %s36_s30 = sadd.s32 1, %s2127_s20 }
  0x37   : > { %p2300_p6 = pnand %p1467_p1, %p188_p4  ;;  %s77_s3 = sadd.s32 1, %s2103_s14 }
  0x38   : > { %p38_p7 = scmp.ge.s32.totalorder %s36_s30, 6  ;;  %p84_p10 = scmp.ne.s32.totalorder %s2103_s14, %s2099_s13 }
  0x39   : > { %p90_p12 = scmp.ne.s32.totalorder %s2099_s13, %s2095_s12  ;;  %s105_s15 = sadd.s32 1, %s2091_s11 }
  0x3a   : > { %s2687_s30 = smov (%p38_p7, %s36_s30), 0  ;;  %s2689_s24 = smov (!%p38_p7, %s40_s24), %s2131_s21 }
  0x3b   : > { %2650 = sst [smem:[#allocation14_spill]] %s2687_s30  ;;  %s73_s6 = ssub.s32 %s2127_s20, %s2687_s30 }
  0x3c   : > { %p2651_p8 = scmp.eq.s32.totalorder %s2135_s22, 0  ;;  %p42_p9 = scmp.ge.s32.totalorder %s2689_s24, 2 }
  0x3d   : > { %p75_p11 = scmp.eq.s32.totalorder %s73_s6, 0  ;;  %p2327_p13 = por %p90_p12, %p2238_p3 }
  0x3e   : > { %p2321_p5 = por %p84_p10, %p2651_p8  ;;  %p115_p0 = scmp.ne.s32.totalorder %s2091_s11, %s2087_s10 }
  0x3f   : > { %s2653_s12 = scalar_select %p2327_p13, 1, 0 }
  0x40   : > { %s2691_s24 = smov (%p42_p9, %s2689_s24), 0  ;;  %p2656_p2 = scmp.ne.s32.totalorder %s2645_s27, 0 }
  0x41   : > { %2654 = sst [smem:[#allocation15_spill]] %s2691_s24  ;;  %s44_s25 = ssub.s32 %s2131_s21, %s2691_s24 }
  0x42   : > { %s2336_s23 = scalar_select %p75_p11, %s2103_s14, %s77_s3  }
  0x43   : > { %p2342_p1 = por %p2656_p2, %p115_p0  ;;  %p47_p4 = scmp.eq.s32.totalorder %s44_s25, 0 }
  0x44   : > { %2655 = sst [smem:[#allocation16_spill]] %s2336_s23  ;;  %s102_s26 = sor.u32 %s73_s6, %s44_s25 }
  0x45   : > { %s2657_s4 = scalar_select %p2342_p1, 1, 0 }
  0x46   : > { %p103_p3 = scmp.eq.s32.totalorder %s102_s26, 0  ;;  %p121_p7 = scmp.ne.s32.totalorder %s2087_s10, %s2083_s9 }
  0x47   : > { %2658 = sst [smem:[#allocation17_spill]] %s2657_s4  ;;  %s2659_s5 = sadd.s32 1, %s2115_s17 }
  0x48   : > { %s2351_s0 = scalar_select %p47_p4, %s2115_s17, %s2659_s5  }
  0x49   : > { %s2354_s30 = scalar_select %p103_p3, %s2091_s11, %s105_s15  }
  0x4a   : > { %p122_p10 = scmp.eq.s32.totalorder %s1457_s29, 11  ;;  %s166_s3 = sand.u32 1, %s2103_s14  }
  0x4b   : > { %s1464_s23 = sshll.u32 %s166_s3, 9  ;;  %s1592_s24 = sshll.u32 %s2127_s20, 7 }
  0x4c   : > { %p2357_p12 = por %p122_p10, %p121_p7  ;;  %s170_s21 = scalar_lea.vmem [#allocation6], %s1464_s23 }
  0x4d   : > { %s180_s2 = sshll.u32 %s170_s21, 4  ;;  %s2365_s6 = scalar_lea.hbm %s2627_s1, %s1592_s24  ;;  %s2367_s2 = int_to_ptr.vmem [resolvable:$true] %s180_s2 }
  0x4e   : > { %s2660_s27 = scalar_select %p2357_p12, 1, 0 }
  0x4f   : > { %p2661_p8 = scmp.lt.s32.totalorder %s2135_s22, 12  ;;  %s2377_s21 = scalar_lea.sflag [#allocation7], %s166_s3 }
  0x50   : > { %s1955_s15 = scalar_lea.hbm %s2365_s6, 8192  ;;  %s1960_s8 = scalar_lea.hbm %s2627_s1, 49152 }
  0x51   : > { %p2373_p9 = pnand %p2661_p8, %p2321_p5  ;;  %p1956_p11 = scmp.ne.s32.totalorder %s2365_s6, %s1955_s15 }
  0x52   : > { %p1961_p5 = scmp.lt.u32.totalorder %s2365_s6, %s2627_s1  ;;  %p1962_p3 = scmp.lt.u32.totalorder %s1960_s8, %s1955_s15 }
  0x53   : > { %p1957_p0 = pneg %p2373_p9  ;;  %p1964_p10 = scmp.lt.u32.totalorder %s1955_s15, %s2365_s6 }
  0x54   : > { %p1963_p7 = por %p1962_p3, %p1961_p5 }
  0x55   : > { %p1958_p2 = pnand %p1957_p0, %p1956_p11 }
  0x56   : > { %p1965_p8 = por %p1964_p10, %p1963_p7 }
  0x57   : > { %p1959_p4 = pneg %p1958_p2 }
  0x59   : > { %p1966_p12 = pnand %p1965_p8, %p1959_p4 }
  0x5b   : > { %1969 = shalt.err (!%p1966_p12)
}
  0x5c   : > { %s1970_s4 = scalar_lea.vmem %s2367_s2, 8192  ;;  %s2140_s26 = smov [#allocation6]  }
  0x5d   : > { %p1971_p11 = scmp.ne.s32.totalorder %s2367_s2, %s1970_s4  ;;  %s1975_s5 = sshll.u32 %s2140_s26, 4  ;;  %s1976_s5 = int_to_ptr.vmem [resolvable:$false] %s1975_s5 }
  0x5e   : > { %s1977_s3 = scalar_lea.vmem %s1976_s5, 16384  ;;  %p1978_p13 = scmp.lt.s32.totalorder %s2367_s2, %s1976_s5 }
  0x5f   : > { %p1973_p2 = pnand %p1971_p11, %p1957_p0  ;;  %p1979_p5 = scmp.lt.s32.totalorder %s1977_s3, %s1970_s4 }
  0x61   : > { %p1974_p1 = pneg %p1973_p2  ;;  %p1980_p3 = por %p1979_p5, %p1978_p13 }
  0x63   : > { %p1981_p7 = pnand %p1980_p3, %p1974_p1 }
  0x65   : > { %1984 = shalt.err (!%p1981_p7)
}
  0x66   : > { %s2141_s15 = smov 768   ;;  %s2142_s18 = smov 128  }
  0x67   : > { %s2143_s24 = smov 8   ;;  %192 = sbr.rel (%p2300_p6) target bundleno = 472 (0x1d8), region = 28 }
  0x68   : > { %1654 = dma.hbm_to_vmem [thread:$0]  (!%p2373_p9), %s2365_s6, 8192, %s2367_s2, %s2377_s21, %s2141_s15, %s2142_s18, %s2143_s24  }
  0x69   : > { %s194_s8 = sand.u32 (!%p2300_p6), 1, %s2111_s16   ;;  %p2663_p13 = scmp.ne.s32.totalorder (!%p2300_p6), %s2646_s28, 0 }
  0x6a   : > { %s1468_s23 = sshll.u32 (!%p2300_p6), %s194_s8, 8  ;;  %s195_s25 = scalar_lea.sflag (!%p2300_p6), [#allocation4], %s194_s8 }
  0x6b   : > { %s2408_s4 = scalar_lea.vmem (!%p2300_p6), [#allocation3], %s1468_s23 }
  0x6e   : > { %2070 = dma.done.wait (%p2663_p13), %s195_s25, 4096  }
  0x6f   : > { %2072 = vsyncadd (%p2663_p13), %s195_s25, 4294963200  ;;  %s203_s26 = sand.u32 1, %s2099_s13   ;;  %p2664_p6 = scmp.ne.s32.totalorder %s2653_s12, 0 }
  0x70   : > { %s1469_s29 = sshll.u32 %s203_s26, 9  ;;  %s204_s2 = scalar_lea.sflag [#allocation7], %s203_s26 }
  0x71   : > { %s2415_s6 = scalar_lea.vmem [#allocation6], %s1469_s29 }
  0x72   : > { %2074 = dma.done.wait (%p2664_p6), %s204_s2, 8192  }
  0x73   : > { %2076 = vsyncadd (%p2664_p6), %s204_s2, 4294959104  ;;  %v1781_v0 = vld [vmem:[%s2415_s6 + $0x4] ss:$8 sps:$4 sm:$0xff]   ;;  %v1785_v2 = vld [vmem:[%s2415_s6] ss:$8 sps:$4 sm:$0xff]   ;;  %s230_s28 = sand.u32 1, %s2087_s10  }
  0x74   : > { %v1783_v1 = vld [vmem:[%s2415_s6 + $0x104] ss:$8 sps:$4 sm:$0xff]   ;;  %883 = vmatprep.subr.bf16.mxu1 %v1781_v0  ;;  %v1786_v3 = vld [vmem:[%s2415_s6 + $0x100] ss:$8 sps:$4 sm:$0xff]   ;;  %v1787_v4 = vld [vmem:[%s2415_s6 + $0x14] ss:$8 sps:$4 sm:$0xff]  }
  0x75   : > { %996 = vmatprep.subr.bf16.mxu0 %v1783_v1  ;;  %884 = vmatpush1.bf16.msra.mxu1 %v1785_v2  ;;  %v1789_v5 = vld [vmem:[%s2415_s6 + $0x114] ss:$8 sps:$4 sm:$0xff]   ;;  %v1791_v6 = vld [vmem:[%s2415_s6 + $0x10] ss:$8 sps:$4 sm:$0xff]   ;;  %v1793_v8 = vld [vmem:[%s2415_s6 + $0x24] ss:$8 sps:$4 sm:$0xff]  }
  0x76   : > { %997 = vmatpush1.bf16.msra.mxu0 %v1786_v3  ;;  %885 = vmatprep.subr.bf16.mxu1 %v1787_v4  ;;  %v1792_v7 = vld [vmem:[%s2415_s6 + $0x110] ss:$8 sps:$4 sm:$0xff]   ;;  %v1795_v9 = vld [vmem:[%s2415_s6 + $0x124] ss:$8 sps:$4 sm:$0xff]   ;;  %v1797_v10 = vld [vmem:[%s2415_s6 + $0x20] ss:$8 sps:$4 sm:$0xff]  }
  0x77   : > { %998 = vmatprep.subr.bf16.mxu0 %v1789_v5  ;;  %v1798_v11 = vld [vmem:[%s2415_s6 + $0x120] ss:$8 sps:$4 sm:$0xff]   ;;  %v1799_v12 = vld [vmem:[%s2415_s6 + $0x34] ss:$8 sps:$4 sm:$0xff]   ;;  %v1803_v14 = vld [vmem:[%s2415_s6 + $0x30] ss:$8 sps:$4 sm:$0xff]  }
  0x78   : > { %v1801_v13 = vld [vmem:[%s2415_s6 + $0x134] ss:$8 sps:$4 sm:$0xff]   ;;  %v1804_v15 = vld [vmem:[%s2415_s6 + $0x130] ss:$8 sps:$4 sm:$0xff]   ;;  %v1805_v16 = vld [vmem:[%s2415_s6 + $0x44] ss:$8 sps:$4 sm:$0xff]  }
  0x79   : > { %886 = vmatpush1.bf16.msra.mxu1 %v1791_v6  ;;  %v1807_v17 = vld [vmem:[%s2415_s6 + $0x144] ss:$8 sps:$4 sm:$0xff]   ;;  %v1809_v18 = vld [vmem:[%s2415_s6 + $0x40] ss:$8 sps:$4 sm:$0xff]   ;;  %v1811_v20 = vld [vmem:[%s2415_s6 + $0x54] ss:$8 sps:$4 sm:$0xff]  }
  0x7a   : > { %999 = vmatpush1.bf16.msra.mxu0 %v1792_v7  ;;  %887 = vmatprep.subr.bf16.mxu1 %v1793_v8  ;;  %v1810_v19 = vld [vmem:[%s2415_s6 + $0x140] ss:$8 sps:$4 sm:$0xff]   ;;  %v1813_v21 = vld [vmem:[%s2415_s6 + $0x154] ss:$8 sps:$4 sm:$0xff]   ;;  %v1815_v22 = vld [vmem:[%s2415_s6 + $0x50] ss:$8 sps:$4 sm:$0xff]  }
  0x7b   : > { %1000 = vmatprep.subr.bf16.mxu0 %v1795_v9  ;;  %v1816_v23 = vld [vmem:[%s2415_s6 + $0x150] ss:$8 sps:$4 sm:$0xff]   ;;  %v1817_v24 = vld [vmem:[%s2415_s6 + $0x64] ss:$8 sps:$4 sm:$0xff]   ;;  %v1821_v26 = vld [vmem:[%s2415_s6 + $0x60] ss:$8 sps:$4 sm:$0xff]  }
  0x7c   : > { %v1819_v25 = vld [vmem:[%s2415_s6 + $0x164] ss:$8 sps:$4 sm:$0xff]   ;;  %v1822_v27 = vld [vmem:[%s2415_s6 + $0x160] ss:$8 sps:$4 sm:$0xff]   ;;  %v1823_v28 = vld [vmem:[%s2415_s6 + $0x74] ss:$8 sps:$4 sm:$0xff]  }
  0x7d   : > { %888 = vmatpush1.bf16.msra.mxu1 %v1797_v10  ;;  %v1825_v29 = vld [vmem:[%s2415_s6 + $0x174] ss:$8 sps:$4 sm:$0xff]   ;;  %v1827_v30 = vld [vmem:[%s2415_s6 + $0x70] ss:$8 sps:$4 sm:$0xff]   ;;  %v1829_v32 = vld [vmem:[%s2415_s6 + $0x84] ss:$8 sps:$4 sm:$0xff]  }
  0x7e   : > { %1001 = vmatpush1.bf16.msra.mxu0 %v1798_v11  ;;  %889 = vmatprep.subr.bf16.mxu1 %v1799_v12  ;;  %v1828_v31 = vld [vmem:[%s2415_s6 + $0x170] ss:$8 sps:$4 sm:$0xff]   ;;  %v1831_v33 = vld [vmem:[%s2415_s6 + $0x184] ss:$8 sps:$4 sm:$0xff]   ;;  %v1833_v34 = vld [vmem:[%s2415_s6 + $0x80] ss:$8 sps:$4 sm:$0xff]  }
  0x7f   : > { %1002 = vmatprep.subr.bf16.mxu0 %v1801_v13  ;;  %v1834_v35 = vld [vmem:[%s2415_s6 + $0x180] ss:$8 sps:$4 sm:$0xff]   ;;  %v1835_v36 = vld [vmem:[%s2415_s6 + $0x94] ss:$8 sps:$4 sm:$0xff]   ;;  %v1839_v38 = vld [vmem:[%s2415_s6 + $0x90] ss:$8 sps:$4 sm:$0xff]  }
  0x80   : > { %v1837_v37 = vld [vmem:[%s2415_s6 + $0x194] ss:$8 sps:$4 sm:$0xff]   ;;  %v1840_v39 = vld [vmem:[%s2415_s6 + $0x190] ss:$8 sps:$4 sm:$0xff]   ;;  %v1841_v40 = vld [vmem:[%s2415_s6 + $0xa4] ss:$8 sps:$4 sm:$0xff]  }
  0x81   : > { %890 = vmatpush1.bf16.msra.mxu1 %v1803_v14  ;;  %v1843_v41 = vld [vmem:[%s2415_s6 + $0x1a4] ss:$8 sps:$4 sm:$0xff]   ;;  %v1845_v42 = vld [vmem:[%s2415_s6 + $0xa0] ss:$8 sps:$4 sm:$0xff]   ;;  %v1847_v44 = vld [vmem:[%s2415_s6 + $0xb4] ss:$8 sps:$4 sm:$0xff]  }
  0x82   : > { %1003 = vmatpush1.bf16.msra.mxu0 %v1804_v15  ;;  %891 = vmatprep.subr.bf16.mxu1 %v1805_v16  ;;  %v1846_v43 = vld [vmem:[%s2415_s6 + $0x1a0] ss:$8 sps:$4 sm:$0xff]   ;;  %v1849_v45 = vld [vmem:[%s2415_s6 + $0x1b4] ss:$8 sps:$4 sm:$0xff]   ;;  %v1851_v46 = vld [vmem:[%s2415_s6 + $0xb0] ss:$8 sps:$4 sm:$0xff]  }
  0x83   : > { %1004 = vmatprep.subr.bf16.mxu0 %v1807_v17  ;;  %v1852_v47 = vld [vmem:[%s2415_s6 + $0x1b0] ss:$8 sps:$4 sm:$0xff]   ;;  %v1853_v48 = vld [vmem:[%s2415_s6 + $0xc4] ss:$8 sps:$4 sm:$0xff]   ;;  %v1857_v52 = vld [vmem:[%s2415_s6 + $0xc0] ss:$8 sps:$4 sm:$0xff]  }
  0x84   : > { %v1879_v49 = vld [vmem:[%s2408_s4 + $0x4] ss:$16 sps:$4 sm:$0xff]   ;;  %v1882_v51 = vld [vmem:[%s2408_s4 + $0xc] ss:$16 sps:$4 sm:$0xff]   ;;  %v1858_v53 = vld [vmem:[%s2415_s6 + $0x1c0] ss:$8 sps:$4 sm:$0xff]  }
  0x85   : > { %892 = vmatpush1.bf16.msra.mxu1 %v1809_v18  ;;  %v1855_v50 = vld [vmem:[%s2415_s6 + $0x1c4] ss:$8 sps:$4 sm:$0xff]   ;;  %915 = vmatprep.mubr.bf16.mxu1 %v1879_v49  ;;  %v1859_v54 = vld [vmem:[%s2415_s6 + $0xd4] ss:$8 sps:$4 sm:$0xff]   ;;  %v1863_v56 = vld [vmem:[%s2415_s6 + $0xd0] ss:$8 sps:$4 sm:$0xff]  }
  0x86   : > { %1005 = vmatpush1.bf16.msra.mxu0 %v1810_v19  ;;  %893 = vmatprep.subr.bf16.mxu1 %v1811_v20  ;;  %v1861_v55 = vld [vmem:[%s2415_s6 + $0x1d4] ss:$8 sps:$4 sm:$0xff]   ;;  %v1864_v57 = vld [vmem:[%s2415_s6 + $0x1d0] ss:$8 sps:$4 sm:$0xff]   ;;  %v1865_v58 = vld [vmem:[%s2415_s6 + $0xe4] ss:$8 sps:$4 sm:$0xff]  }
  0x87   : > { %1006 = vmatprep.subr.bf16.mxu0 %v1813_v21  ;;  %1028 = vmatprep.mubr.bf16.mxu0 %v1882_v51  ;;  %v1867_v59 = vld [vmem:[%s2415_s6 + $0x1e4] ss:$8 sps:$4 sm:$0xff]   ;;  %v1869_v60 = vld [vmem:[%s2415_s6 + $0xe0] ss:$8 sps:$4 sm:$0xff]   ;;  %v1871_v62 = vld [vmem:[%s2415_s6 + $0xf4] ss:$8 sps:$4 sm:$0xff]  }
  0x88   : > { %v1870_v61 = vld [vmem:[%s2415_s6 + $0x1e0] ss:$8 sps:$4 sm:$0xff]   ;;  %v1873_v63 = vld [vmem:[%s2415_s6 + $0x1f4] ss:$8 sps:$4 sm:$0xff]   ;;  %v1875_v0 = vld [vmem:[%s2415_s6 + $0xf0] ss:$8 sps:$4 sm:$0xff]  }
  0x89   : > { %894 = vmatpush1.bf16.msra.mxu1 %v1815_v22  ;;  %v1876_v1 = vld [vmem:[%s2415_s6 + $0x1f0] ss:$8 sps:$4 sm:$0xff]   ;;  %v1883_v4 = vld [vmem:[%s2408_s4 + $0x24] ss:$16 sps:$4 sm:$0xff]   ;;  %v1885_v5 = vld [vmem:[%s2408_s4 + $0x2c] ss:$16 sps:$4 sm:$0xff]  }
  0x8a   : > { %1007 = vmatpush1.bf16.msra.mxu0 %v1816_v23  ;;  %895 = vmatprep.subr.bf16.mxu1 %v1817_v24  ;;  %v1877_v2 = vld [vmem:[%s2408_s4] ss:$16 sps:$4 sm:$0xff]   ;;  %v1880_v3 = vld [vmem:[%s2408_s4 + $0x8] ss:$16 sps:$4 sm:$0xff]   ;;  %v1889_v8 = vld [vmem:[%s2408_s4 + $0x44] ss:$16 sps:$4 sm:$0xff]  }
  0x8b   : > { %1008 = vmatprep.subr.bf16.mxu0 %v1819_v25  ;;  %v1887_v6 = vld [vmem:[%s2408_s4 + $0x20] ss:$16 sps:$4 sm:$0xff]   ;;  %v1888_v7 = vld [vmem:[%s2408_s4 + $0x28] ss:$16 sps:$4 sm:$0xff]   ;;  %v1891_v9 = vld [vmem:[%s2408_s4 + $0x4c] ss:$16 sps:$4 sm:$0xff]  }
  0x8c   : > { %v1893_v10 = vld [vmem:[%s2408_s4 + $0x40] ss:$16 sps:$4 sm:$0xff]   ;;  %v1894_v11 = vld [vmem:[%s2408_s4 + $0x48] ss:$16 sps:$4 sm:$0xff]   ;;  %v1895_v12 = vld [vmem:[%s2408_s4 + $0x64] ss:$16 sps:$4 sm:$0xff]  }
  0x8d   : > { %896 = vmatpush1.bf16.msra.mxu1 %v1821_v26  ;;  %v1897_v13 = vld [vmem:[%s2408_s4 + $0x6c] ss:$16 sps:$4 sm:$0xff]   ;;  %v1899_v14 = vld [vmem:[%s2408_s4 + $0x60] ss:$16 sps:$4 sm:$0xff]   ;;  %v1900_v15 = vld [vmem:[%s2408_s4 + $0x68] ss:$16 sps:$4 sm:$0xff]  }
  0x8e   : > { %1009 = vmatpush1.bf16.msra.mxu0 %v1822_v27  ;;  %897 = vmatprep.subr.bf16.mxu1 %v1823_v28  ;;  %v1901_v16 = vld [vmem:[%s2408_s4 + $0x84] ss:$16 sps:$4 sm:$0xff]   ;;  %v1903_v17 = vld [vmem:[%s2408_s4 + $0x8c] ss:$16 sps:$4 sm:$0xff]   ;;  %v1905_v18 = vld [vmem:[%s2408_s4 + $0x80] ss:$16 sps:$4 sm:$0xff]  }
  0x8f   : > { %1010 = vmatprep.subr.bf16.mxu0 %v1825_v29  ;;  %v1906_v19 = vld [vmem:[%s2408_s4 + $0x88] ss:$16 sps:$4 sm:$0xff]   ;;  %v1907_v20 = vld [vmem:[%s2408_s4 + $0xa4] ss:$16 sps:$4 sm:$0xff]   ;;  %v1909_v21 = vld [vmem:[%s2408_s4 + $0xac] ss:$16 sps:$4 sm:$0xff]  }
  0x90   : > { %v1911_v22 = vld [vmem:[%s2408_s4 + $0xa0] ss:$16 sps:$4 sm:$0xff]   ;;  %v1912_v23 = vld [vmem:[%s2408_s4 + $0xa8] ss:$16 sps:$4 sm:$0xff]   ;;  %v1913_v24 = vld [vmem:[%s2408_s4 + $0xc4] ss:$16 sps:$4 sm:$0xff]  }
  0x91   : > { %898 = vmatpush1.bf16.msra.mxu1 %v1827_v30  ;;  %v1915_v25 = vld [vmem:[%s2408_s4 + $0xcc] ss:$16 sps:$4 sm:$0xff]   ;;  %v1917_v26 = vld [vmem:[%s2408_s4 + $0xc0] ss:$16 sps:$4 sm:$0xff]   ;;  %v1918_v27 = vld [vmem:[%s2408_s4 + $0xc8] ss:$16 sps:$4 sm:$0xff]  }
  0x92   : > { %1011 = vmatpush1.bf16.msra.mxu0 %v1828_v31  ;;  %899 = vmatprep.subr.bf16.mxu1 %v1829_v32  ;;  %v1919_v28 = vld [vmem:[%s2408_s4 + $0xe4] ss:$16 sps:$4 sm:$0xff]   ;;  %v1921_v29 = vld [vmem:[%s2408_s4 + $0xec] ss:$16 sps:$4 sm:$0xff]   ;;  %v1923_v30 = vld [vmem:[%s2408_s4 + $0xe0] ss:$16 sps:$4 sm:$0xff]  }
  0x93   : > { %1012 = vmatprep.subr.bf16.mxu0 %v1831_v33  ;;  %v1924_v31 = vld [vmem:[%s2408_s4 + $0xe8] ss:$16 sps:$4 sm:$0xff]   ;;  %s1470_s7 = sshll.u32 %s230_s28, 7  ;;  %s2665_s21 = sld [smem:[#allocation12_spill]] }
  0x94   : > { %s2520_s12 = scalar_lea.vmem [#allocation8], %s1470_s7  ;;  %s1641_s5 = smul.u32 192, %s2123_s19 }
  0x95   : > { %900 = vmatpush1.bf16.msra.mxu1 %v1833_v34  ;;  %s2666_s18 = sld [smem:[#allocation17_spill]]  ;;  %s1337_s24 = sshll.u32 %s2520_s12, 4  ;;  %s2544_s24 = int_to_ptr.vmem [resolvable:$true] %s1337_s24 }
  0x96   : > { %1013 = vmatpush1.bf16.msra.mxu0 %v1834_v35  ;;  %901 = vmatprep.subr.bf16.mxu1 %v1835_v36  ;;  %s2667_s25 = sld [smem:[#allocation19_spill]]  ;;  %s2550_s26 = scalar_lea.sflag [#allocation5], %s230_s28 }
  0x97   : > { %1014 = vmatprep.subr.bf16.mxu0 %v1837_v37  ;;  %s1985_s29 = scalar_lea.vmem %s2544_s24, 2048  ;;  %s2144_s2 = smov [#allocation8]  }
  0x98   : > { %p1986_p1 = scmp.ne.s32.totalorder %s2544_s24, %s1985_s29  ;;  %s1989_s6 = sshll.u32 %s2144_s2, 4  ;;  %s1990_s6 = int_to_ptr.vmem [resolvable:$false] %s1989_s6 }
  0x99   : > { %902 = vmatpush1.bf16.msra.mxu1 %v1839_v38  ;;  %s1585_s3 = sshll.u32 %s2665_s21, 1  ;;  %s1991_s7 = scalar_lea.vmem %s1990_s6, 4096 }
  0x9a   : > { %1015 = vmatpush1.bf16.msra.mxu0 %v1840_v39  ;;  %903 = vmatprep.subr.bf16.mxu1 %v1841_v40  ;;  %s1334_s15 = sadd.s32 %s1641_s5, %s1585_s3  ;;  %p1992_p4 = scmp.lt.s32.totalorder %s2544_s24, %s1990_s6 }
  0x9b   : > { %1016 = vmatprep.subr.bf16.mxu0 %v1843_v41  ;;  %s1587_s19 = sshll.u32 %s1334_s15, 6  ;;  %p2668_p12 = scmp.ne.s32.totalorder %s2666_s18, 0 }
  0x9c   : > { %s2542_s4 = scalar_lea.hbm %s2667_s25, %s1587_s19  ;;  %p1993_p10 = scmp.lt.s32.totalorder %s1991_s7, %s1985_s29 }
  0x9d   : > { %904 = vmatpush1.bf16.msra.mxu1 %v1845_v42  ;;  %p1987_p9 = pnand %p1986_p1, %p2668_p12 }
  0x9e   : > { %1017 = vmatpush1.bf16.msra.mxu0 %v1846_v43  ;;  %905 = vmatprep.subr.bf16.mxu1 %v1847_v44  ;;  %p1994_p8 = por %p1993_p10, %p1992_p4 }
  0x9f   : > { %1018 = vmatprep.subr.bf16.mxu0 %v1849_v45  ;;  %p1988_p0 = pneg %p1987_p9 }
  0xa1   : > { %906 = vmatpush1.bf16.msra.mxu1 %v1851_v46  ;;  %p1995_p11 = pnand %p1994_p8, %p1988_p0 }
  0xa2   : > { %1019 = vmatpush1.bf16.msra.mxu0 %v1852_v47  ;;  %907 = vmatprep.subr.bf16.mxu1 %v1853_v48 }
  0xa3   : > { %1020 = vmatprep.subr.bf16.mxu0 %v1855_v50 }
  0xa5   : > { %908 = vmatpush1.bf16.msra.mxu1 %v1857_v52 }
  0xa6   : > { %1021 = vmatpush1.bf16.msra.mxu0 %v1858_v53  ;;  %909 = vmatprep.subr.bf16.mxu1 %v1859_v54 }
  0xa7   : > { %1022 = vmatprep.subr.bf16.mxu0 %v1861_v55 }
  0xa9   : > { %910 = vmatpush1.bf16.msra.mxu1 %v1863_v56 }
  0xaa   : > { %1023 = vmatpush1.bf16.msra.mxu0 %v1864_v57  ;;  %911 = vmatprep.subr.bf16.mxu1 %v1865_v58 }
  0xab   : > { %1024 = vmatprep.subr.bf16.mxu0 %v1867_v59 }
  0xad   : > { %912 = vmatpush1.bf16.msra.mxu1 %v1869_v60 }
  0xae   : > { %1025 = vmatpush1.bf16.msra.mxu0 %v1870_v61  ;;  %913 = vmatprep.subr.bf16.mxu1 %v1871_v62 }
  0xaf   : > { %1026 = vmatprep.subr.bf16.mxu0 %v1873_v63 }
  0xb1   : > { %914 = vmatpush1.bf16.msra.mxu1 %v1875_v0 }
  0xb2   : > { %1027 = vmatpush1.bf16.msra.mxu0 %v1876_v1 }
  0xb4   : > { %916 = vmatmul.mubr.bf16.vlgmr.msra.gmra.mrb[0].mxu1 %v1877_v2 }
  0xb5   : > { %1029 = vmatmul.mubr.bf16.vlgmr.msra.gmra.mrb[0].mxu0 %v1880_v3  ;;  %925 = vmatprep.mubr.bf16.mxu1 %v1883_v4 }
  0xb6   : > { %1038 = vmatprep.mubr.bf16.mxu0 %v1885_v5 }
  0xbc   : > { %926 = vmatmul.mubr.bf16.gmra.mrb[4].mxu1 %v1887_v6 }
  0xbd   : > { %1039 = vmatmul.mubr.bf16.gmra.mrb[4].mxu0 %v1888_v7  ;;  %935 = vmatprep.mubr.bf16.mxu1 %v1889_v8 }
  0xbe   : > { %1048 = vmatprep.mubr.bf16.mxu0 %v1891_v9 }
  0xc4   : > { %936 = vmatmul.mubr.bf16.gmra.mrb[8].mxu1 %v1893_v10 }
  0xc5   : > { %1049 = vmatmul.mubr.bf16.gmra.mrb[8].mxu0 %v1894_v11  ;;  %945 = vmatprep.mubr.bf16.mxu1 %v1895_v12 }
  0xc6   : > { %1058 = vmatprep.mubr.bf16.mxu0 %v1897_v13 }
  0xcc   : > { %946 = vmatmul.mubr.bf16.gmra.mrb[12].mxu1 %v1899_v14 }
  0xcd   : > { %1059 = vmatmul.mubr.bf16.gmra.mrb[12].mxu0 %v1900_v15  ;;  %955 = vmatprep.mubr.bf16.mxu1 %v1901_v16 }
  0xce   : > { %1068 = vmatprep.mubr.bf16.mxu0 %v1903_v17 }
  0xd4   : > { %956 = vmatmul.mubr.bf16.gmra.mrb[16].mxu1 %v1905_v18 }
  0xd5   : > { %1069 = vmatmul.mubr.bf16.gmra.mrb[16].mxu0 %v1906_v19  ;;  %965 = vmatprep.mubr.bf16.mxu1 %v1907_v20 }
  0xd6   : > { %1078 = vmatprep.mubr.bf16.mxu0 %v1909_v21 }
  0xdc   : > { %966 = vmatmul.mubr.bf16.gmra.mrb[20].mxu1 %v1911_v22 }
  0xdd   : > { %1079 = vmatmul.mubr.bf16.gmra.mrb[20].mxu0 %v1912_v23  ;;  %975 = vmatprep.mubr.bf16.mxu1 %v1913_v24 }
  0xde   : > { %1088 = vmatprep.mubr.bf16.mxu0 %v1915_v25 }
  0xe4   : > { %976 = vmatmul.mubr.bf16.gmra.mrb[24].mxu1 %v1917_v26 }
  0xe5   : > { %1089 = vmatmul.mubr.bf16.gmra.mrb[24].mxu0 %v1918_v27  ;;  %985 = vmatprep.mubr.bf16.mxu1 %v1919_v28 }
  0xe6   : > { %1098 = vmatprep.mubr.bf16.mxu0 %v1921_v29 }
  0xec   : > { %986 = vmatmul.mubr.bf16.gmra.mrb[28].mxu1 %v1923_v30 }
  0xed   : > { %1099 = vmatmul.mubr.bf16.gmra.mrb[28].mxu0 %v1924_v31 }
 0x187   : > { %v917_v32 = vpop.f32.mrb[0].mxu1 }
 0x188   : > { %v1030_v33 = vpop.f32.mrb[0].mxu0  ;;  %v919_v35 = vpop.f32.mrb[1].mxu1 }
 0x189   : > { %v1031_v34 = vadd.f32 %v1030_v33, %v917_v32  ;;  %v1032_v36 = vpop.f32.mrb[1].mxu0  ;;  %v921_v38 = vpop.f32.mrb[2].mxu1 }
 0x18a   : > { %v1033_v37 = vadd.f32 %v1032_v36, %v919_v35  ;;  %v1034_v39 = vpop.f32.mrb[2].mxu0  ;;  %v923_v41 = vpop.f32.mrb[3].mxu1 }
 0x18b   : > { %v1035_v40 = vadd.f32 %v1034_v39, %v921_v38  ;;  %v1036_v42 = vpop.f32.mrb[3].mxu0 }
 0x18c   : > { %v1593_v43 = vpack.c.bf16 %v1033_v37, %v1031_v34  ;;  %v1037_v44 = vadd.f32 %v1036_v42, %v923_v41 }
 0x18e   : > { %1304 = vst [vmem:[%s2520_s12] sm:$0xff] %v1593_v43  ;;  %v1594_v45 = vpack.c.bf16 %v1037_v44, %v1035_v40 }
 0x18f   : > { %v927_v46 = vpop.f32.mrb[4].mxu1 }
 0x190   : > { %1305 = vst [vmem:[%s2520_s12 + $0x8] sm:$0xff] %v1594_v45  ;;  %v1040_v47 = vpop.f32.mrb[4].mxu0  ;;  %v929_v49 = vpop.f32.mrb[5].mxu1 }
 0x191   : > { %v1041_v48 = vadd.f32 %v1040_v47, %v927_v46  ;;  %v1042_v50 = vpop.f32.mrb[5].mxu0  ;;  %v931_v52 = vpop.f32.mrb[6].mxu1 }
 0x192   : > { %v1043_v51 = vadd.f32 %v1042_v50, %v929_v49  ;;  %v1044_v53 = vpop.f32.mrb[6].mxu0  ;;  %v933_v55 = vpop.f32.mrb[7].mxu1 }
 0x193   : > { %v1045_v54 = vadd.f32 %v1044_v53, %v931_v52  ;;  %v1046_v56 = vpop.f32.mrb[7].mxu0 }
 0x194   : > { %v1595_v57 = vpack.c.bf16 %v1043_v51, %v1041_v48  ;;  %v1047_v58 = vadd.f32 %v1046_v56, %v933_v55 }
 0x196   : > { %1306 = vst [vmem:[%s2520_s12 + $0x10] sm:$0xff] %v1595_v57  ;;  %v1596_v59 = vpack.c.bf16 %v1047_v58, %v1045_v54 }
 0x197   : > { %v937_v60 = vpop.f32.mrb[8].mxu1 }
 0x198   : > { %1307 = vst [vmem:[%s2520_s12 + $0x18] sm:$0xff] %v1596_v59  ;;  %v1050_v61 = vpop.f32.mrb[8].mxu0  ;;  %v939_v63 = vpop.f32.mrb[9].mxu1 }
 0x199   : > { %v1051_v62 = vadd.f32 %v1050_v61, %v937_v60  ;;  %v1052_v0 = vpop.f32.mrb[9].mxu0  ;;  %v941_v2 = vpop.f32.mrb[10].mxu1 }
 0x19a   : > { %v1053_v1 = vadd.f32 %v1052_v0, %v939_v63  ;;  %v1054_v3 = vpop.f32.mrb[10].mxu0  ;;  %v943_v5 = vpop.f32.mrb[11].mxu1 }
 0x19b   : > { %v1055_v4 = vadd.f32 %v1054_v3, %v941_v2  ;;  %v1056_v6 = vpop.f32.mrb[11].mxu0 }
 0x19c   : > { %v1597_v7 = vpack.c.bf16 %v1053_v1, %v1051_v62  ;;  %v1057_v8 = vadd.f32 %v1056_v6, %v943_v5 }
 0x19e   : > { %1308 = vst [vmem:[%s2520_s12 + $0x20] sm:$0xff] %v1597_v7  ;;  %v1598_v9 = vpack.c.bf16 %v1057_v8, %v1055_v4 }
 0x19f   : > { %v947_v10 = vpop.f32.mrb[12].mxu1 }
 0x1a0   : > { %1309 = vst [vmem:[%s2520_s12 + $0x28] sm:$0xff] %v1598_v9  ;;  %v1060_v11 = vpop.f32.mrb[12].mxu0  ;;  %v949_v13 = vpop.f32.mrb[13].mxu1 }
 0x1a1   : > { %v1061_v12 = vadd.f32 %v1060_v11, %v947_v10  ;;  %v1062_v14 = vpop.f32.mrb[13].mxu0  ;;  %v951_v16 = vpop.f32.mrb[14].mxu1 }
 0x1a2   : > { %v1063_v15 = vadd.f32 %v1062_v14, %v949_v13  ;;  %v1064_v17 = vpop.f32.mrb[14].mxu0  ;;  %v953_v19 = vpop.f32.mrb[15].mxu1 }
 0x1a3   : > { %v1065_v18 = vadd.f32 %v1064_v17, %v951_v16  ;;  %v1066_v20 = vpop.f32.mrb[15].mxu0 }
 0x1a4   : > { %v1599_v21 = vpack.c.bf16 %v1063_v15, %v1061_v12  ;;  %v1067_v22 = vadd.f32 %v1066_v20, %v953_v19 }
 0x1a6   : > { %1310 = vst [vmem:[%s2520_s12 + $0x30] sm:$0xff] %v1599_v21  ;;  %v1600_v23 = vpack.c.bf16 %v1067_v22, %v1065_v18 }
 0x1a7   : > { %v957_v24 = vpop.f32.mrb[16].mxu1 }
 0x1a8   : > { %1311 = vst [vmem:[%s2520_s12 + $0x38] sm:$0xff] %v1600_v23  ;;  %v1070_v25 = vpop.f32.mrb[16].mxu0  ;;  %v959_v27 = vpop.f32.mrb[17].mxu1 }
 0x1a9   : > { %v1071_v26 = vadd.f32 %v1070_v25, %v957_v24  ;;  %v1072_v28 = vpop.f32.mrb[17].mxu0  ;;  %v961_v30 = vpop.f32.mrb[18].mxu1 }
 0x1aa   : > { %v1073_v29 = vadd.f32 %v1072_v28, %v959_v27  ;;  %v1074_v31 = vpop.f32.mrb[18].mxu0  ;;  %v963_v33 = vpop.f32.mrb[19].mxu1 }
 0x1ab   : > { %v1075_v32 = vadd.f32 %v1074_v31, %v961_v30  ;;  %v1076_v34 = vpop.f32.mrb[19].mxu0 }
 0x1ac   : > { %v1601_v35 = vpack.c.bf16 %v1073_v29, %v1071_v26  ;;  %v1077_v36 = vadd.f32 %v1076_v34, %v963_v33 }
 0x1ae   : > { %1312 = vst [vmem:[%s2520_s12 + $0x40] sm:$0xff] %v1601_v35  ;;  %v1602_v37 = vpack.c.bf16 %v1077_v36, %v1075_v32 }
 0x1af   : > { %v967_v38 = vpop.f32.mrb[20].mxu1 }
 0x1b0   : > { %1313 = vst [vmem:[%s2520_s12 + $0x48] sm:$0xff] %v1602_v37  ;;  %v1080_v39 = vpop.f32.mrb[20].mxu0  ;;  %v969_v41 = vpop.f32.mrb[21].mxu1 }
 0x1b1   : > { %v1081_v40 = vadd.f32 %v1080_v39, %v967_v38  ;;  %v1082_v42 = vpop.f32.mrb[21].mxu0  ;;  %v971_v44 = vpop.f32.mrb[22].mxu1 }
 0x1b2   : > { %v1083_v43 = vadd.f32 %v1082_v42, %v969_v41  ;;  %v1084_v45 = vpop.f32.mrb[22].mxu0  ;;  %v973_v47 = vpop.f32.mrb[23].mxu1 }
 0x1b3   : > { %v1085_v46 = vadd.f32 %v1084_v45, %v971_v44  ;;  %v1086_v48 = vpop.f32.mrb[23].mxu0 }
 0x1b4   : > { %v1603_v49 = vpack.c.bf16 %v1083_v43, %v1081_v40  ;;  %v1087_v50 = vadd.f32 %v1086_v48, %v973_v47 }
 0x1b6   : > { %1314 = vst [vmem:[%s2520_s12 + $0x50] sm:$0xff] %v1603_v49  ;;  %v1604_v51 = vpack.c.bf16 %v1087_v50, %v1085_v46 }
 0x1b7   : > { %v977_v52 = vpop.f32.mrb[24].mxu1 }
 0x1b8   : > { %1315 = vst [vmem:[%s2520_s12 + $0x58] sm:$0xff] %v1604_v51  ;;  %v1090_v53 = vpop.f32.mrb[24].mxu0  ;;  %v979_v55 = vpop.f32.mrb[25].mxu1 }
 0x1b9   : > { %v1091_v54 = vadd.f32 %v1090_v53, %v977_v52  ;;  %v1092_v56 = vpop.f32.mrb[25].mxu0  ;;  %v981_v58 = vpop.f32.mrb[26].mxu1 }
 0x1ba   : > { %v1093_v57 = vadd.f32 %v1092_v56, %v979_v55  ;;  %v1094_v59 = vpop.f32.mrb[26].mxu0  ;;  %v983_v61 = vpop.f32.mrb[27].mxu1 }
 0x1bb   : > { %v1095_v60 = vadd.f32 %v1094_v59, %v981_v58  ;;  %v1096_v62 = vpop.f32.mrb[27].mxu0 }
 0x1bc   : > { %v1605_v63 = vpack.c.bf16 %v1093_v57, %v1091_v54  ;;  %v1097_v0 = vadd.f32 %v1096_v62, %v983_v61 }
 0x1be   : > { %1316 = vst [vmem:[%s2520_s12 + $0x60] sm:$0xff] %v1605_v63  ;;  %v1606_v1 = vpack.c.bf16 %v1097_v0, %v1095_v60 }
 0x1bf   : > { %v987_v2 = vpop.f32.mrb[28].mxu1 }
 0x1c0   : > { %1317 = vst [vmem:[%s2520_s12 + $0x68] sm:$0xff] %v1606_v1  ;;  %v1100_v3 = vpop.f32.mrb[28].mxu0  ;;  %v989_v5 = vpop.f32.mrb[29].mxu1 }
 0x1c1   : > { %v1101_v4 = vadd.f32 %v1100_v3, %v987_v2  ;;  %v1102_v6 = vpop.f32.mrb[29].mxu0  ;;  %v991_v8 = vpop.f32.mrb[30].mxu1 }
 0x1c2   : > { %v1103_v7 = vadd.f32 %v1102_v6, %v989_v5  ;;  %v1104_v9 = vpop.f32.mrb[30].mxu0  ;;  %v993_v11 = vpop.f32.mrb[31].mxu1 }
 0x1c3   : > { %v1105_v10 = vadd.f32 %v1104_v9, %v991_v8  ;;  %v1106_v12 = vpop.f32.mrb[31].mxu0 }
 0x1c4   : > { %v1607_v13 = vpack.c.bf16 %v1103_v7, %v1101_v4  ;;  %v1107_v14 = vadd.f32 %v1106_v12, %v993_v11 }
 0x1c6   : > { %1318 = vst [vmem:[%s2520_s12 + $0x70] sm:$0xff] %v1607_v13  ;;  %v1608_v15 = vpack.c.bf16 %v1107_v14, %v1105_v10 }
 0x1c8   : > { %1319 = vst [vmem:[%s2520_s12 + $0x78] sm:$0xff] %v1608_v15 }
 0x1c9   : > { %1998 = shalt.err (!%p1995_p11)
}
 0x1ca   : > { %s1999_s28 = scalar_lea.hbm %s2542_s4, 2048  ;;  %s2003_s5 = scalar_lea.hbm %s2667_s25, 24576 }
 0x1cb   : > { %p2000_p2 = scmp.ne.s32.totalorder %s2542_s4, %s1999_s28  ;;  %p2004_p7 = scmp.lt.u32.totalorder %s2542_s4, %s2667_s25 }
 0x1cc   : > { %p2005_p13 = scmp.lt.u32.totalorder %s2003_s5, %s1999_s28  ;;  %p2007_p1 = scmp.lt.u32.totalorder %s1999_s28, %s2542_s4 }
 0x1cd   : > { %p2001_p5 = pnand %p2000_p2, %p2668_p12 }
 0x1ce   : > { %p2006_p6 = por %p2005_p13, %p2004_p7 }
 0x1cf   : > { %p2002_p3 = pneg %p2001_p5 }
 0x1d0   : > { %p2008_p9 = por %p2007_p1, %p2006_p6 }
 0x1d2   : > { %p2009_p0 = pnand %p2008_p9, %p2002_p3 }
 0x1d4   : > { %2012 = shalt.err (!%p2009_p0)
}
 0x1d5   : > { %s2145_s19 = smov 128   ;;  %s2146_s8 = smov 768  }
 0x1d6   : > { %s2147_s23 = smov 8  }
 0x1d7   : > { %1646 = dma.vmem_to_hbm [thread:$0]  (%p2668_p12), %s2544_s24, 2048, %s2542_s4, %s2550_s26, %s2145_s19, %s2146_s8, %s2147_s23  }
 0x1d8 PF: > { %p1660_p4 = scmp.ge.s32.totalorder %s2135_s22, 2  ;;  %s1352_s29 = sand.u32 1, %s2083_s9  }
 0x1d9   : > { %p2669_p10 = scmp.ne.s32.totalorder %s2660_s27, 0  ;;  %s1353_s2 = scalar_lea.sflag [#allocation5], %s1352_s29 }
 0x1db   : > { %p1656_p8 = pnand %p1660_p4, %p2669_p10 }
 0x1dd   : > { %2078 = dma.done.wait (!%p1656_p8), %s1353_s2, 2048  }
 0x1de   : > { %2080 = vsyncadd (!%p1656_p8), %s1353_s2, 4294965248  ;;  %s21_s22 = sadd.s32 1, %s2135_s22   ;;  %s2671_s18 = sld [smem:[#allocation16_spill]] }
 0x1df   : > { %p2579_p11 = scmp.ge.s32.totalorder %s21_s22, 14   ;;  %s2672_s19 = sld [smem:[#allocation13_spill]] }
 0x1e0   : > { %s2673_s27 = sld [smem:[#allocation14_spill]]  ;;  %s2674_s21 = sld [smem:[#allocation15_spill]] }
 0x1e1   : > { %s2675_s9 = smov %s2087_s10  ;;  %s2676_s10 = smov %s2091_s11 }
 0x1e2   : > { %s2677_s11 = smov %s2354_s30  ;;  %s2678_s12 = smov %s2099_s13 }
 0x1e3   : > { %s2679_s13 = smov %s2103_s14  ;;  %s2681_s15 = smov %s2111_s16 }
 0x1e4   : > { %s2680_s14 = smov %s2671_s18  ;;  %s2682_s16 = smov %s2115_s17 }
 0x1e5   : > { %s2683_s17 = smov %s2351_s0  ;;  %s2684_s18 = smov %s2127_s20 }
 0x1e6   : > { %s2685_s20 = smov %s2673_s27  ;;  %20 = sbr.rel (!%p2579_p11) target bundleno = 15 (0xf), region = 94 }
 0x1ed   :  { %1358 = vsyncpa [#allocation4], 1 }
 0x1ee   :  { %1360 = vsyncpa [#allocation4 + $0x1], 1 }
 0x1ef   :  { %1361 = vsyncpa [#allocation7], 1 }
 0x1f0   :  { %1363 = vsyncpa [#allocation7 + $0x1], 1 }
 0x1f1   :  { %1364 = vsyncpa [#allocation5], 1 }
 0x1f2   :  { %1366 = vsyncpa [#allocation5 + $0x1], 1 }

</bundles_post_ra>
